<compile_context>
chip_gen: v5e
topology: v5e:2x2
jax: 0.10.0
libtpu: 0.0.40
codegen_flags: <defaults>
</compile_context>

<pallas_src>
import functools

import jax
import jax.numpy as jnp
from jax.experimental import pallas as pl
from jax.experimental.pallas import tpu as pltpu


def _cross_entropy_kernel(x_ref, t_ref, part_ref, *, n_valid, block_n):
    # x_ref:    (BLOCK_N, C) native dtype, VMEM
    # t_ref:    (BLOCK_N, 1) int32, VMEM
    # part_ref: (1, 8, 128)  f32, VMEM -- per-block partial sum (broadcast-filled)
    i = pl.program_id(0)

    x = x_ref[...].astype(jnp.float32)      # per-tile upcast (no-op for f32 inputs)
    bn, c = x.shape

    # Stable log-sum-exp (max-subtracted): same math as the module's
    # x - log(sum(exp(x), dim=1)) but overflow-free.
    m = jnp.max(x, axis=1, keepdims=True)                                   # (bn, 1)
    lse = m + jnp.log(jnp.sum(jnp.exp(x - m), axis=1, keepdims=True))       # (bn, 1)

    # Gather x[r, target[r]] with compare+select+sum (no (bn, C) log-prob tile).
    col_ids = jax.lax.broadcasted_iota(jnp.int32, (bn, c), 1)
    picked_x = jnp.sum(jnp.where(col_ids == t_ref[...], x, 0.0),
                       axis=1, keepdims=True)                               # (bn, 1)

    picked = picked_x - lse                                                 # log p[target]

    # Rows past n_valid come from the ragged edge block (unspecified data read by the
    # edge DMA).  Drop them with a select (never a multiply: NaN * 0 = NaN).
    row_ids = jax.lax.broadcasted_iota(jnp.int32, (bn, 1), 0) + i * block_n
    picked = jnp.where(row_ids < n_valid, picked, 0.0)

    neg_sum = -jnp.sum(picked)
    part_ref[...] = jnp.full(part_ref.shape, neg_sum, dtype=jnp.float32)


def cross_entropy(inputs, targets, *, block_n=None):
    """inputs: (N, C) float array (any float dtype); targets: (N,) int array.
    Returns scalar f32 loss = -mean(log_softmax(inputs)[i, targets[i]]).
    Note: like the reference module, no ignore_index / class weights."""
    n, c = inputs.shape
    itemsize = jnp.dtype(inputs.dtype).itemsize
    # Sublane multiple for the input dtype (f32: 8, bf16: 16, int8/fp8: 32).
    sub = {4: 8, 2: 16, 1: 32}.get(itemsize, 8)

    if block_n is None:
        # ~6 MiB f32-equivalent working tile; HBM-bound kernel so the biggest tile
        # that still double-buffers comfortably wins (per-step overhead ~0.35 us).
        tile_f32_target = 6 * 1024 * 1024
        block_n = max(sub, (tile_f32_target // max(c * 4, 1) // sub) * sub)
    else:
        block_n = max(sub, (block_n // sub) * sub)

    if block_n >= n:
        if n > sub:
            # Whole problem fits in one tile: split into ~two even sublane-aligned
            # blocks so the "parallel" axis feeds both v7x TensorCores.
            half = (n + 1) // 2
            block_n = ((half + sub - 1) // sub) * sub
        else:
            # Tiny N: a single full-extent block (allowed: equals the full array dim).
            block_n = n

    num_blocks = pl.cdiv(n, block_n)

    # No jnp.pad of the logits: ragged last block is handled in-kernel by the row mask.
    x = inputs                                   # native dtype, no wrapper-side cast
    t = targets.astype(jnp.int32).reshape(n, 1)  # tiny; reshape is free

    # Explicit VMEM budget: 2x double-buffered native tile + ~6x f32-sized temporaries,
    # clamped to 48 MiB so it leaves headroom inside v7x's 64 MiB physical VMEM.
    tile_native = block_n * c * itemsize
    tile_f32 = block_n * c * 4
    vmem_limit = int(min(48 * 1024 * 1024,
                         max(16 * 1024 * 1024, 2 * tile_native + 6 * tile_f32)))

    kernel = functools.partial(_cross_entropy_kernel, n_valid=n, block_n=block_n)

    partials = pl.pallas_call(
        kernel,
        out_shape=jax.ShapeDtypeStruct((num_blocks, 8, 128), jnp.float32),
        grid_spec=pltpu.PrefetchScalarGridSpec(
            num_scalar_prefetch=0,
            grid=(num_blocks,),
            in_specs=[
                pl.BlockSpec((block_n, c), lambda i: (i, 0)),
                pl.BlockSpec((block_n, 1), lambda i: (i, 0)),
            ],
            out_specs=pl.BlockSpec((1, 8, 128), lambda i: (i, 0, 0)),
        ),
        compiler_params=pltpu.CompilerParams(
            dimension_semantics=("parallel",),
            vmem_limit_bytes=vmem_limit,
        ),
        cost_estimate=pl.CostEstimate(
            flops=5 * n * c,
            transcendentals=n * c + n,
            bytes_accessed=n * c * itemsize + n * 4 + num_blocks * 8 * 128 * 4,
        ),
    )(x, t)

    return jnp.sum(partials[:, 0, 0]) / jnp.float32(n)


def _reference(x, targets):
    logp = x.astype(jnp.float32)
    logp = logp - jnp.log(jnp.sum(jnp.exp(logp), axis=1, keepdims=True))
    return -jnp.mean(logp[jnp.arange(x.shape[0]), targets])


if __name__ == "__main__":
    key = jax.random.PRNGKey(0)
    k1, k2, k3, k4, k5, k6 = jax.random.split(key, 6)

    # Case 1: lane-friendly shape; single-tile problem split across 2 blocks.
    N, C = 64, 256
    x = jax.random.normal(k1, (N, C), dtype=jnp.float32)
    tgt = jax.random.randint(k2, (N,), 0, C, dtype=jnp.int32)
    loss = cross_entropy(x, tgt)
    jax.block_until_ready(loss)
    ref = _reference(x, tgt)
    assert jnp.allclose(loss, ref, atol=1e-5, rtol=1e-5), (loss, ref)

    # Case 2: ragged N (partial edge block, no wrapper padding) and small C.
    N2, C2 = 13, 40
    x2 = jax.random.normal(k3, (N2, C2), dtype=jnp.float32)
    tgt2 = jax.random.randint(k4, (N2,), 0, C2, dtype=jnp.int32)
    loss2 = cross_entropy(x2, tgt2)
    jax.block_until_ready(loss2)
    ref2 = _reference(x2, tgt2)
    assert jnp.allclose(loss2, ref2, atol=1e-5, rtol=1e-5), (loss2, ref2)

    # Case 3: bf16 logits (16-row sublane rounding + in-kernel upcast).
    N3, C3 = 48, 160
    x3 = jax.random.normal(k5, (N3, C3), dtype=jnp.float32).astype(jnp.bfloat16)
    tgt3 = jax.random.randint(k6, (N3,), 0, C3, dtype=jnp.int32)
    loss3 = cross_entropy(x3, tgt3)
    jax.block_until_ready(loss3)
    ref3 = _reference(x3, tgt3)
    assert jnp.allclose(loss3, ref3, atol=1e-4, rtol=1e-4), (loss3, ref3)

    print("KERNEL_OK")
</pallas_src>

<mosaic_0001>
module attributes {stable_mosaic.version = 11 : i64} {
  func.func @_cross_entropy_kernel(%arg0: i32, %arg1: memref<32x256xf32, #tpu.memory_space<vmem>>, %arg2: memref<32x1xi32, #tpu.memory_space<vmem>>, %arg3: memref<1x8x128xf32, #tpu.memory_space<vmem>>) attributes {dimension_semantics = [#tpu.dimension_semantics<parallel>], iteration_bounds = array<i64: 2>, scalar_prefetch = 0 : i64, scratch_operands = 0 : i64, tpu.core_type = #tpu.core_type<tc>, window_params = [{transform_indices = @transform_0, window_bounds = array<i64: 32, 256>}, {transform_indices = @transform_1, window_bounds = array<i64: 32, 1>}, {transform_indices = @transform_2, window_bounds = array<i64: 1, 8, 128>}]} {
    %c0 = arith.constant 0 : index
    %c0_0 = arith.constant 0 : index
    %0 = vector.load %arg1[%c0, %c0_0] : memref<32x256xf32, #tpu.memory_space<vmem>>, vector<32x256xf32>
    %cst = arith.constant dense<0xFF800000> : vector<32xf32>
    %1 = vector.multi_reduction <maximumf>, %0, %cst [1] : vector<32x256xf32> to vector<32xf32>
    %2 = vector.shape_cast %1 : vector<32xf32> to vector<32x1xf32>
    %3 = vector.broadcast %2 : vector<32x1xf32> to vector<32x256xf32>
    %4 = arith.subf %0, %3 : vector<32x256xf32>
    %5 = math.exp %4 : vector<32x256xf32>
    %cst_1 = arith.constant dense<0.000000e+00> : vector<32xf32>
    %6 = vector.multi_reduction <add>, %5, %cst_1 [1] : vector<32x256xf32> to vector<32xf32>
    %7 = vector.shape_cast %6 : vector<32xf32> to vector<32x1xf32>
    %8 = math.log %7 : vector<32x1xf32>
    %9 = arith.addf %2, %8 : vector<32x1xf32>
    %10 = tpu.iota {dimensions = array<i32: 1>} : vector<32x256xi32>
    %c0_2 = arith.constant 0 : index
    %c0_3 = arith.constant 0 : index
    %11 = vector.load %arg2[%c0_2, %c0_3] : memref<32x1xi32, #tpu.memory_space<vmem>>, vector<32x1xi32>
    %12 = vector.broadcast %11 : vector<32x1xi32> to vector<32x256xi32>
    %13 = arith.cmpi eq, %10, %12 : vector<32x256xi32>
    %cst_4 = arith.constant 0.000000e+00 : f32
    %14 = vector.broadcast %cst_4 : f32 to vector<32x256xf32>
    %15 = arith.select %13, %0, %14 : vector<32x256xi1>, vector<32x256xf32>
    %cst_5 = arith.constant dense<0.000000e+00> : vector<32xf32>
    %16 = vector.multi_reduction <add>, %15, %cst_5 [1] : vector<32x256xf32> to vector<32xf32>
    %17 = vector.shape_cast %16 : vector<32xf32> to vector<32x1xf32>
    %18 = arith.subf %17, %9 : vector<32x1xf32>
    %19 = tpu.iota {dimensions = array<i32: 0>} : vector<32x1xi32>
    %c32_i32 = arith.constant 32 : i32
    %20 = arith.muli %arg0, %c32_i32 : i32
    %21 = vector.broadcast %20 : i32 to vector<32x1xi32>
    %22 = arith.addi %19, %21 : vector<32x1xi32>
    %c64_i32 = arith.constant 64 : i32
    %23 = vector.broadcast %c64_i32 : i32 to vector<32x1xi32>
    %24 = arith.cmpi slt, %22, %23 : vector<32x1xi32>
    %cst_6 = arith.constant 0.000000e+00 : f32
    %25 = vector.broadcast %cst_6 : f32 to vector<32x1xf32>
    %26 = arith.select %24, %18, %25 : vector<32x1xi1>, vector<32x1xf32>
    %27 = vector.shape_cast %26 : vector<32x1xf32> to vector<1x32x1xf32>
    %cst_7 = arith.constant dense<0.000000e+00> : vector<1xf32>
    %28 = vector.multi_reduction <add>, %27, %cst_7 [1, 2] : vector<1x32x1xf32> to vector<1xf32>
    %29 = vector.shape_cast %28 : vector<1xf32> to vector<1x1x1xf32>
    %30 = vector.extract %29[0, 0, 0] : f32 from vector<1x1x1xf32>
    %cst_8 = arith.constant 0.000000e+00 : f32
    %31 = arith.subf %cst_8, %30 : f32
    %32 = vector.broadcast %31 : f32 to vector<1x8x128xf32>
    %c0_9 = arith.constant 0 : index
    %c0_10 = arith.constant 0 : index
    %c0_11 = arith.constant 0 : index
    %33 = vector.load %arg3[%c0_9, %c0_10, %c0_11] : memref<1x8x128xf32, #tpu.memory_space<vmem>>, vector<1x8x128xf32>
    tpu.vector_store %arg3[%c0_9, %c0_10, %c0_11], %32 {strides = array<i32>} : memref<1x8x128xf32, #tpu.memory_space<vmem>>, vector<1x8x128xf32>,
    return
  }
  func.func @transform_0(%arg0: i32) -> (i32, i32) {
    %c0_i32 = arith.constant 0 : i32
    %c0_i32_0 = arith.constant 0 : i32
    return %arg0, %c0_i32 : i32, i32
  }
  func.func @transform_1(%arg0: i32) -> (i32, i32) {
    %c0_i32 = arith.constant 0 : i32
    %c0_i32_0 = arith.constant 0 : i32
    return %arg0, %c0_i32 : i32, i32
  }
  func.func @transform_2(%arg0: i32) -> (i32, i32, i32) {
    %c0_i32 = arith.constant 0 : i32
    %c0_i32_0 = arith.constant 0 : i32
    %c0_i32_1 = arith.constant 0 : i32
    return %arg0, %c0_i32, %c0_i32_0 : i32, i32, i32
  }
}

</mosaic_0001>

<bundles_post_ra>
// kernel: tpu_custom_call.1
= control target key start
LH: loop header
LB: loop body
LE: loop exit
PB: predicated region body
PF: predicated region fallthrough
CT: control target
= control target key end

     0   :  { %7 = vsyncpa [#allocation3], 0  ;;  %s842_s0 = inlined_call_operand.hbm [shape: f32[64,256], index: 0, kind: input, shape index: {}]   ;;  %s843_s1 = inlined_call_operand.vmem [shape: s32[64,1], index: 1, kind: input, shape index: {}]   ;;  %s844_s2 = inlined_call_operand.hbm [shape: f32[2,8,128], index: 2, kind: output, shape index: {}]  }
   0x1   :  { %9 = vsyncpa [#allocation3 + $0x1], 0 }
   0x2   :  { %10 = vsyncpa [#allocation4], 0 }
   0x3   :  { %12 = vsyncpa [#allocation4 + $0x1], 0  ;;  %s657_s9 = smov 0   ;;  %s659_s10 = smov 0  }
   0x4   :  { %s661_s11 = smov 0   ;;  %s663_s12 = smov 0  }
   0x5 LB: > { %s678_s13 = sadd.s32 4294967295, %s637_s12   ;;  %s444_s14 = sadd.s32 4294967294, %s637_s12   ;;  %s637_s12 = sphi %s663_s12, %s854_s12   ;;  %s633_s11 = sphi %s661_s11, %s853_s11   ;;  %s629_s10 = sphi %s659_s10, %s852_s10   ;;  %s625_s9 = sphi %s657_s9, %s851_s9  }
   0x6   : > { %s682_s15 = sadd.s32 1, %s637_s12   ;;  %s25_s16 = sadd.s32 1, %s633_s11 }
   0x7   : > { %s22_s17 = ssub.s32 %s637_s12, %s682_s15  ;;  %p32_p0 = scmp.ne.s32.totalorder %s633_s11, %s629_s10 }
   0x8   : > { %p23_p1 = scmp.eq.s32.totalorder %s22_s17, 0  ;;  %p33_p2 = scmp.eq.s32.totalorder %s637_s12, 0 }
   0x9   : > { %p38_p3 = scmp.ne.s32.totalorder %s629_s10, %s625_s9  ;;  %p39_p4 = scmp.eq.s32.totalorder %s678_s13, 0 }
   0xa   : > { %s694_s18 = scalar_select %p23_p1, %s633_s11, %s25_s16  }
   0xb   : > { %p696_p5 = por %p33_p2, %p32_p0  ;;  %p700_p6 = por %p39_p4, %p38_p3 }
   0xc   : > { %p88_p7 = scmp.eq.s32.totalorder %s678_s13, 1  ;;  %p94_p8 = scmp.eq.s32.totalorder %s444_s14, 1 }
   0xd   : > { %p477_p10 = scmp.lt.s32.totalorder %s637_s12, 2  ;;  %s114_s23 = sand.u32 1, %s633_s11  }
   0xe   : > { %p707_p11 = por %p88_p7, %p32_p0  ;;  %p711_p12 = por %p94_p8, %p38_p3 }
   0xf   : > { %s462_s24 = sshll.u32 %s637_s12, 6  ;;  %s447_s25 = sshll.u32 %s114_s23, 6 }
  0x10   : > { %s124_s28 = scalar_lea.hbm %s842_s0, %s462_s24  ;;  %s118_s30 = scalar_lea.vmem [#allocation2], %s447_s25 }
  0x11   : > { %s125_s29 = sshll.u32 %s124_s28, 4  ;;  %s127_s3 = sshll.u32 %s118_s30, 4  ;;  %s126_s29 = int_to_ptr.hbm [resolvable:$true] %s125_s29  ;;  %s128_s3 = int_to_ptr.vmem [resolvable:$true] %s127_s3 }
  0x12   : > { %p722_p13 = pnand %p477_p10, %p696_p5  ;;  %p451_p0 = scmp.ge.s32.totalorder %s637_s12, 1 }
  0x13   : > { %p144_p1 = scmp.lt.s32.totalorder %s637_s12, 3  ;;  %s115_s5 = scalar_lea.sflag [#allocation3], %s114_s23 }
  0x14   : > { %s541_s6 = sshra.s32 %s126_s29, 4  ;;  %p545_p3 = pneg %p722_p13  ;;  %s542_s6 = int_to_ptr.hbm [resolvable:$true] %s541_s6 }
  0x15   : > { %s543_s7 = scalar_lea.hbm %s542_s6, 64  ;;  %s548_s16 = scalar_lea.hbm %s842_s0, 128 }
  0x16   : > { %p544_p2 = scmp.ne.s32.totalorder %s542_s6, %s543_s7  ;;  %p549_p5 = scmp.lt.s32.totalorder %s542_s6, %s842_s0 }
  0x17   : > { %p550_p8 = scmp.lt.s32.totalorder %s548_s16, %s543_s7 }
  0x18   : > { %p546_p4 = pnand %p545_p3, %p544_p2 }
  0x19   : > { %p551_p10 = por %p550_p8, %p549_p5 }
  0x1a   : > { %p547_p7 = pneg %p546_p4 }
  0x1c   : > { %p552_p9 = pnand %p551_p10, %p547_p7 }
  0x1e   : > { %555 = shalt.err (!%p552_p9)
}
  0x1f   : > { %s639_s23 = smov 256   ;;  %s640_s24 = smov 16  }
  0x20   : > { %472 = dma.hbm_to_vmem [thread:$0]  (!%p722_p13), %s126_s29, 1024, %s128_s3, %s115_s5, %s639_s23, %s639_s23, %s640_s24  }
  0x21   : > { %p145_p2 = pnand %p451_p0, %p144_p1 }
  0x22   : > { %s743_s25 = sand.u32 (!%p145_p2), 1, %s629_s10  }
  0x23   : > { %148 = sbr.rel (%p145_p2) target bundleno = 516 (0x204), region = 28  ;;  %s452_s26 = sshll.u32 (!%p145_p2), %s743_s25, 6 }
  0x24   : > { %s151_s27 = scalar_lea.sflag (!%p145_p2), [#allocation3], %s743_s25  ;;  %s154_s28 = scalar_lea.vmem (!%p145_p2), [#allocation2], %s452_s26 }
  0x28   : > { %616 = dma.done.wait (%p700_p6), %s151_s27, 1024  }
  0x29   : > { %618 = vsyncadd (%p700_p6), %s151_s27, 4294966272  ;;  %s454_s29 = sshll.u32 %s678_s13, 2  ;;  %v641_v0 = vmov 0   ;;  %v755_v1 = vld [vmem:[%s154_s28 + $0x20] sm:$0xff]  ;;  %v757_v2 = vld [vmem:[%s154_s28 + $0x28] sm:$0xff]  ;;  %v256_v25 = vlaneseq  ;;  %s456_s20 = sshll.u32 %s678_s13, 5 }
  0x2a   : > { %514 = vset.pattern.permute.xlu2 %v641_v0  ;;  %p183_p9 = scmp.lt.s32.totalorder %s454_s29, 7  ;;  %516 = vset.pattern.permute.xlu1 %v641_v0  ;;  %v188_v3 = vld [vmem:[%s154_s28] sm:$0xff]  ;;  %v202_v4 = vmax.f32 %v755_v1, %v757_v2  ;;  %v189_v5 = vld [vmem:[%s154_s28 + $0x8] sm:$0xff]  ;;  %v761_v8 = vld [vmem:[%s154_s28 + $0x30] sm:$0xff]  ;;  %vm326_vm10 = vcmask 7168   ;;  %s453_s6 = sshll.u32 %s743_s25, 3 }
  0x2b   : > { %515 = vset.pattern.permute.xlu0 %v641_v0  ;;  %v196_v6 = vmax.f32 %v188_v3, %v189_v5  ;;  %v763_v9 = vld [vmem:[%s154_s28 + $0x38] sm:$0xff]  ;;  %v765_v10 = vld [vmem:[%s154_s28 + $0x10] sm:$0xff]  ;;  %v257_v28 = vand.u32 127, %v256_v25  ;;  %s458_s7 = sshll.u32 %s678_s13, 3  ;;  %s180_s17 = scalar_lea.vmem [#allocation5], %s453_s6 }
  0x2c   : > { %s856_s29 = smov (!%p183_p9, %s454_s29), 7  ;;  %203 = vmax.xlane.f32.xlu1 %v202_v4  ;;  %v767_v11 = vld [vmem:[%s154_s28 + $0x18] sm:$0xff]  ;;  %v205_v12 = vmax.f32 %v761_v8, %v763_v9  ;;  %s357_s16 = scalar_lea.hbm %s844_s2, %s458_s7 }
  0x2d   : > { %s455_s30 = sshll.u32 %s856_s29, 3  ;;  %197 = vmax.xlane.f32.xlu0 %v196_v6  ;;  %v199_v13 = vmax.f32 %v765_v10, %v767_v11  ;;  %v258_v34 = vadd.s32 128, %v257_v28  ;;  %s359_s19 = sshll.u32 %s180_s17, 4  ;;  %s360_s19 = int_to_ptr.vmem [resolvable:$true] %s359_s19 }
  0x2e   : > { %s186_s5 = scalar_lea.vmem %s843_s1, %s455_s30  ;;  %s361_s23 = sshll.u32 %s357_s16, 4  ;;  %s362_s23 = int_to_ptr.hbm [resolvable:$true] %s361_s23 }
  0x2f   : > { %v259_v7 = vld [vmem:[%s186_s5] sm:$0xff]  ;;  %v260_v14 = vld [vmem:[%s186_s5 + $0x8] sm:$0xff]  ;;  %v261_v15 = vld [vmem:[%s186_s5 + $0x10] sm:$0xff]  ;;  %s347_s27 = scalar_lea.sflag [#allocation4], %s743_s25  ;;  %s585_s28 = sshra.s32 %s362_s23, 4  ;;  %s586_s28 = int_to_ptr.hbm [resolvable:$true] %s585_s28 }
  0x30   : > { %264 = vperm.xlu2 %514, %v259_v7   ;;  %v262_v16 = vld [vmem:[%s186_s5 + $0x18] sm:$0xff]  ;;  %s587_s29 = scalar_lea.hbm %s586_s28, 8  ;;  %s591_s3 = scalar_lea.hbm %s844_s2, 16 }
  0x31   : > { %p588_p6 = scmp.ne.s32.totalorder %s586_s28, %s587_s29  ;;  %p592_p1 = scmp.lt.s32.totalorder %s586_s28, %s844_s2 }
  0x32   : > { %p593_p3 = scmp.lt.s32.totalorder %s591_s3, %s587_s29 }
  0x33   : > { %p589_p13 = pnand %p588_p6, %p707_p11 }
  0x34   : > { %206 = vmax.xlane.f32.xlu1 %v205_v12  ;;  %v308_v12 = vshrl.u32 %v256_v25, 7  ;;  %p594_p4 = por %p593_p3, %p592_p1 }
  0x35   : > { %200 = vmax.xlane.f32.xlu0 %v199_v13  ;;  %p590_p0 = pneg %p589_p13 }
  0x36   : > { %v310_v25 = vadd.s32 16, %v308_v12 }
  0x37   : > { %p595_p7 = pnand %p594_p4, %p590_p0 }
  0x38   : > { %267 = vperm.xlu2 %514, %v260_v14  }
  0x49   : > { %270 = vperm.xlu0 %515, %v261_v15  }
  0x4d   : > { %273 = vperm.xlu1 %516, %v262_v16  }
  0x8a   : > { %v265_v41 = vpop.permute.xlu2 %264 }
  0x8b   : > { %vm275_vm0 = vcmp.eq.s32.totalorder %v257_v28, %v265_v41  ;;  %vm276_vm1 = vcmp.eq.s32.totalorder %v258_v34, %v265_v41 }
  0x8c   : > { %v283_v47 = vsel %vm275_vm0, %v188_v3, 0.0  ;;  %v284_v48 = vsel %vm276_vm1, %v189_v5, 0.0 }
  0x8d   : > { %v291_v51 = vadd.f32 %v284_v48, %v283_v47 }
  0x92   : > { %v268_v56 = vpop.permute.xlu2 %267 }
  0x93   : > { %vm277_vm2 = vcmp.eq.s32.totalorder %v257_v28, %v268_v56  ;;  %vm278_vm3 = vcmp.eq.s32.totalorder %v258_v34, %v268_v56 }
  0x94   : > { %v285_v61 = vsel %vm277_vm2, %v765_v10, 0.0  ;;  %v286_v62 = vsel %vm278_vm3, %v767_v11, 0.0 }
  0x95   : > { %v294_v0 = vadd.f32 %v286_v62, %v285_v61 }
  0x9f   : > { %v773_v17 = vpop.xlane.xlu1 %203 }
  0xa0   : > { %v212_v18 = vsub.f32 %v755_v1, %v773_v17  ;;  %v213_v19 = vsub.f32 %v757_v2, %v773_v17  ;;  %v779_v20 = vpop.xlane.xlu0 %197 }
  0xa1   : > { %v208_v21 = vsub.f32 %v188_v3, %v779_v20  ;;  %v209_v22 = vsub.f32 %v189_v5, %v779_v20 }
  0xa2   : > { %v224_v23 = vmul.f32 1.442695, %v212_v18  ;;  %v226_v24 = vmul.f32 1.442695, %v213_v19 }
  0xa3   : > { %v216_v26 = vmul.f32 1.442695, %v208_v21  ;;  %v218_v27 = vmul.f32 1.442695, %v209_v22 }
  0xa4   : > { %517 = vpow2.f32 %v224_v23 }
  0xa5   : > { %519 = vpow2.f32 %v226_v24 }
  0xa6   : > { %521 = vpow2.f32 %v216_v26 }
  0xa7   : > { %523 = vpow2.f32 %v218_v27  ;;  %v784_v29 = vpop.xlane.xlu1 %206  ;;  %v311_v27 = vadd.s32 24, %v308_v12 }
  0xa8   : > { %v786_v30 = vpop.xlane.xlu0 %200  ;;  %v214_v35 = vsub.f32 %v761_v8, %v784_v29  ;;  %v215_v39 = vsub.f32 %v763_v9, %v784_v29 }
  0xa9   : > { %v210_v31 = vsub.f32 %v765_v10, %v786_v30  ;;  %v211_v32 = vsub.f32 %v767_v11, %v786_v30 }
  0xaa   : > { %v518_v33 = vpop.eup %517  ;;  %v228_v45 = vmul.f32 1.442695, %v214_v35  ;;  %v230_v46 = vmul.f32 1.442695, %v215_v39 }
  0xab   : > { %v520_v36 = vpop.eup %519  ;;  %v220_v37 = vmul.f32 1.442695, %v210_v31  ;;  %v222_v38 = vmul.f32 1.442695, %v211_v32 }
  0xac   : > { %v522_v40 = vpop.eup %521  ;;  %v238_v42 = vadd.f32 %v520_v36, %v518_v33 }
  0xad   : > { %v524_v43 = vpop.eup %523  ;;  %525 = vpow2.f32 %v220_v37 }
  0xae   : > { %527 = vpow2.f32 %v222_v38  ;;  %239 = vadd.xlane.f32.xlu0 %v238_v42  ;;  %v232_v44 = vadd.f32 %v524_v43, %v522_v40 }
  0xaf   : > { %529 = vpow2.f32 %v228_v45 }
  0xb0   : > { %233 = vadd.xlane.f32.xlu2 %v232_v44  ;;  %531 = vpow2.f32 %v230_v46 }
  0xb3   : > { %v526_v49 = vpop.eup %525 }
  0xb4   : > { %v528_v50 = vpop.eup %527 }
  0xb5   : > { %v235_v52 = vadd.f32 %v528_v50, %v526_v49  ;;  %v530_v53 = vpop.eup %529 }
  0xb6   : > { %v532_v54 = vpop.eup %531 }
  0xb7   : > { %236 = vadd.xlane.f32.xlu1 %v235_v52  ;;  %v241_v55 = vadd.f32 %v532_v54, %v530_v53 }
  0xb8   : > { %292 = vadd.xlane.f32.xlu2 %v291_v51 }
  0xbb   : > { %v271_v63 = vpop.permute.xlu0 %270 }
  0xbc   : > { %vm279_vm6 = vcmp.eq.s32.totalorder %v257_v28, %v271_v63  ;;  %vm280_vm7 = vcmp.eq.s32.totalorder %v258_v34, %v271_v63 }
  0xbd   : > { %v287_v3 = vsel %vm279_vm6, %v755_v1, 0.0  ;;  %v288_v4 = vsel %vm280_vm7, %v757_v2, 0.0  ;;  %v309_v1 = vadd.s32 8, %v308_v12  ;;  %v313_v2 = vstv %s456_s20 }
  0xbe   : > { %v297_v5 = vadd.f32 %v288_v4, %v287_v3  ;;  %v314_v23 = vadd.s32 %v313_v2, %v308_v12  ;;  %v316_v36 = vadd.s32 %v313_v2, %v310_v25 }
  0xbf   : > { %v274_v57 = vpop.permute.xlu1 %273  ;;  %v315_v16 = vadd.s32 %v313_v2, %v309_v1 }
  0xc0   : > { %242 = vadd.xlane.f32.xlu2 %v241_v55  ;;  %vm281_vm4 = vcmp.eq.s32.totalorder %v257_v28, %v274_v57  ;;  %vm282_vm5 = vcmp.eq.s32.totalorder %v258_v34, %v274_v57  ;;  %vm318_vm9 = vcmp.lt.s32.totalorder %v314_v23, 64  ;;  %v317_v34 = vadd.s32 %v313_v2, %v311_v27 }
  0xc1   : > { %v289_v58 = vsel %vm281_vm4, %v761_v8, 0.0  ;;  %v290_v59 = vsel %vm282_vm5, %v763_v9, 0.0  ;;  %vm319_vm8 = vcmp.lt.s32.totalorder %v315_v16, 64  ;;  %vm320_vm12 = vcmp.lt.s32.totalorder %v316_v36, 64 }
  0xc2   : > { %v300_v60 = vadd.f32 %v290_v59, %v289_v58  ;;  %vm321_vm11 = vcmp.lt.s32.totalorder %v317_v34, 64 }
  0xc4   : > { %301 = vadd.xlane.f32.xlu1 %v300_v60 }
  0xc8   : > { %295 = vadd.xlane.f32.xlu2 %v294_v0 }
  0xd0   : > { %298 = vadd.xlane.f32.xlu2 %v297_v5 }
 0x121   : > { %v240_v10 = vpop.xlane.xlu0 %239 }
 0x123   : > { %v234_v6 = vpop.xlane.xlu2 %233 }
 0x124   : > { %533 = vlog2.f32 %v234_v6 }
 0x12a   : > { %v237_v7 = vpop.xlane.xlu1 %236  ;;  %v534_v9 = vpop.eup %533 }
 0x12b   : > { %v293_v8 = vpop.xlane.xlu2 %292  ;;  %535 = vlog2.f32 %v237_v7  ;;  %v245_v14 = vmul.f32 0.6931472, %v534_v9 }
 0x12d   : > { %v252_v19 = vadd.f32 %v245_v14, %v779_v20 }
 0x12f   : > { %v303_v32 = vsub.f32 %v293_v8, %v252_v19 }
 0x131   : > { %v536_v11 = vpop.eup %535  ;;  %v322_v20 = vsel %vm318_vm9, %v303_v32, 0.0 }
 0x132   : > { %v247_v15 = vmul.f32 0.6931472, %v536_v11  ;;  %v327_v42 = vsel %vm326_vm10, %v322_v20, 0.0 }
 0x133   : > { %v243_v13 = vpop.xlane.xlu2 %242 }
 0x134   : > { %537 = vlog2.f32 %v243_v13  ;;  %v253_v21 = vadd.f32 %v247_v15, %v786_v30 }
 0x135   : > { %539 = vlog2.f32 %v240_v10 }
 0x137   : > { %v302_v35 = vpop.xlane.xlu1 %301 }
 0x13a   : > { %v538_v18 = vpop.eup %537 }
 0x13b   : > { %v540_v22 = vpop.eup %539  ;;  %v251_v24 = vmul.f32 0.6931472, %v538_v18  ;;  %v296_v26 = vpop.xlane.xlu2 %295 }
 0x13c   : > { %v304_v28 = vsub.f32 %v296_v26, %v253_v21  ;;  %v249_v31 = vmul.f32 0.6931472, %v540_v22 }
 0x13d   : > { %v255_v33 = vadd.f32 %v251_v24, %v784_v29 }
 0x13e   : > { %v323_v37 = vsel %vm319_vm8, %v304_v28, 0.0  ;;  %v254_v38 = vadd.f32 %v249_v31, %v773_v17 }
 0x13f   : > { %v306_v30 = vsub.f32 %v302_v35, %v255_v33  ;;  %v328_v39 = vsel %vm326_vm10, %v323_v37, 0.0 }
 0x140   : > { %v329_v43 = vadd.f32 %v328_v39, %v327_v42 }
 0x141   : > { %v325_v44 = vsel %vm321_vm11, %v306_v30, 0.0 }
 0x142   : > { %v332_v47 = vsel %vm326_vm10, %v325_v44, 0.0 }
 0x143   : > { %v299_v40 = vpop.xlane.xlu2 %298 }
 0x144   : > { %v305_v41 = vsub.f32 %v299_v40, %v254_v38 }
 0x146   : > { %v324_v29 = vsel %vm320_vm12, %v305_v41, 0.0 }
 0x147   : > { %v330_v45 = vsel %vm326_vm10, %v324_v29, 0.0 }
 0x148   : > { %v331_v46 = vadd.f32 %v330_v45, %v329_v43 }
 0x14a   : > { %v333_v48 = vadd.f32 %v332_v47, %v331_v46 }
 0x14c   : > { %334 = vadd.xlane.f32.xlu2 %v333_v48 }
 0x1bf   : > { %v335_v49 = vpop.xlane.xlu2 %334 }
 0x1c0   : > { %v336_v50 = vrot.slane %v335_v49, 4 }
 0x1c2   : > { %v337_v51 = vadd.f32 %v336_v50, %v335_v49 }
 0x1c4   : > { %v338_v17 = vrot.slane %v337_v51, 2 }
 0x1c6   : > { %v339_v52 = vadd.f32 %v338_v17, %v337_v51 }
 0x1c8   : > { %v340_v53 = vrot.slane %v339_v52, 1 }
 0x1ca   : > { %v341_v54 = vadd.f32 %v340_v53, %v339_v52 }
 0x1cc   : > { %463 = vpush %v341_v54 }
 0x1fd   : > { %s464_s24 = spop %463 }
 0x1fe   : > { %s343_s26 = ssub.f32 0.0, %s464_s24 }
 0x200   : > { %v344_v55 = vstv %s343_s26 }
 0x201   : > { %345 = vst [vmem:[%s180_s17] sm:$0xff] %v344_v55 }
 0x202   : > { %598 = shalt.err (!%p595_p7)
}
 0x203   : > { %467 = dma.vmem_to_hbm [thread:$0]  (%p707_p11), %s360_s19, 128, %s362_s23, %s347_s27  }
 0x204 PF: > { %s373_s25 = sand.u32 1, %s625_s9   ;;  %p850_p5 = scmp.ge.s32.totalorder %s637_s12, 2 }
 0x205   : > { %s374_s20 = scalar_lea.sflag [#allocation4], %s373_s25 }
 0x206   : > { %p474_p8 = pnand %p850_p5, %p711_p12 }
 0x208   : > { %p475_p10 = pneg %p474_p8 }
 0x20a   : > { %620 = dma.done.wait (%p475_p10), %s374_s20, 128  }
 0x20b   : > { %622 = vsyncadd (%p475_p10), %s374_s20, 4294967168  ;;  %p15_p2 = scmp.ge.s32.totalorder %s682_s15, 4   ;;  %s851_s9 = smov %s629_s10 }
 0x20c   : > { %s852_s10 = smov %s633_s11  ;;  %s853_s11 = smov %s694_s18 }
 0x20d   : > { %s854_s12 = smov %s682_s15  ;;  %17 = sbr.rel (!%p15_p2) target bundleno = 5 (0x5), region = 76 }
 0x212   :  { %380 = vsyncpa [#allocation3], 1 }
 0x213   :  { %382 = vsyncpa [#allocation3 + $0x1], 1 }
 0x214   :  { %383 = vsyncpa [#allocation4], 1 }
 0x215   :  { %385 = vsyncpa [#allocation4 + $0x1], 1 }

</bundles_post_ra>
